<compile_context>
chip_gen: v5e
topology: v5e:2x2
jax: 0.10.0
libtpu: 0.0.40
codegen_flags: <defaults>
</compile_context>

<pallas_src>
import jax
import jax.numpy as jnp
from jax.experimental import pallas as pl
from jax.experimental.pallas import tpu as pltpu


def _relu_colsum_x2_kernel(x_ref, o_ref):
    # x_ref: (C, TB) -- channels on sublanes, batch on lanes.
    r = jnp.maximum(x_ref[...], 0).astype(jnp.float32)          # relu, then f32 accum
    s = jnp.sum(r, axis=0, keepdims=True)                       # (1, TB), lane-dense
    o_ref[...] = (2.0 * s).astype(o_ref.dtype)                  # x2 replaces the concat


def _choose_batch_tile(B, C, in_bytes, budget_bytes=2 << 20):
    """Lane-aligned batch tile sized from a per-block VMEM budget."""
    if B < 256:
        # Can't split into >=2 lane-aligned (multiple-of-128) tiles; one full block.
        return B
    # Bytes per batch column: input column (C elems) + f32 output elem, double-buffered.
    per_batch = 2 * (C * in_bytes + 4)
    tb = max(128, (budget_bytes // per_batch) // 128 * 128)
    # Guarantee >= 2 grid steps so both v7x TensorCores are used.
    half = ((B + 1) // 2 + 127) // 128 * 128
    return min(tb, half)


@jax.jit
def model_forward(x):
    """Equivalent of Model.forward for x of shape (B, C, L) -> (B, 1)."""
    B, C, L = x.shape
    in_bytes = jnp.dtype(x.dtype).itemsize

    # Last-element slice + transpose so batch maps to the lane axis (lane-dense
    # input for small C, lane-dense output).  With allow_input_fusion this is
    # fused into the Pallas operand under jit rather than a separate HBM pass.
    last_t = jnp.swapaxes(x[..., L - 1], 0, 1)                   # (C, B)

    tb = _choose_batch_tile(B, C, in_bytes)
    grid = (pl.cdiv(B, tb),)

    # VMEM needed: double-buffered input block + output block, plus slack.
    vmem_bytes = 2 * (tb * C * in_bytes + tb * 4) + (1 << 20)
    vmem_limit = int(min(64 << 20, max(4 << 20, vmem_bytes)))

    out = pl.pallas_call(
        _relu_colsum_x2_kernel,
        out_shape=jax.ShapeDtypeStruct((1, B), x.dtype),
        grid=grid,
        in_specs=[pl.BlockSpec((C, tb), lambda i: (0, i))],
        out_specs=pl.BlockSpec((1, tb), lambda i: (0, i)),
        compiler_params=pltpu.CompilerParams(
            dimension_semantics=("parallel",),
            allow_input_fusion=[True],
            vmem_limit_bytes=vmem_limit,
        ),
        cost_estimate=pl.CostEstimate(
            flops=2 * B * C,
            transcendentals=0,
            bytes_accessed=B * C * in_bytes + B * in_bytes,
        ),
    )(last_t)

    return out.reshape(B, 1)


if __name__ == "__main__":
    key = jax.random.PRNGKey(0)
    # Same shape as the PyTorch snippet: torch.randn(2, 3, 4)
    x = jax.random.normal(key, (2, 3, 4), dtype=jnp.float32)

    out = model_forward(x)
    out = jax.block_until_ready(out)

    # Reference check in plain JAX (same semantics as the torch module).
    last = x[..., -1]
    ref = jnp.sum(jnp.maximum(jnp.concatenate([last, last], axis=1), 0.0),
                  axis=1, keepdims=True)
    assert out.shape == (2, 1)
    assert jnp.allclose(out, ref, atol=1e-5, rtol=1e-5)

    print("KERNEL_OK")
</pallas_src>

<mosaic_0001>
module attributes {stable_mosaic.version = 11 : i64} {
  func.func @_relu_colsum_x2_kernel(%arg0: i32, %arg1: memref<3x2xf32, #tpu.memory_space<vmem>>, %arg2: memref<1x2xf32, #tpu.memory_space<vmem>>) attributes {dimension_semantics = [#tpu.dimension_semantics<parallel>], iteration_bounds = array<i64: 1>, scalar_prefetch = 0 : i64, scratch_operands = 0 : i64, tpu.core_type = #tpu.core_type<tc>, window_params = [{transform_indices = @transform_0, window_bounds = array<i64: 3, 2>}, {transform_indices = @transform_1, window_bounds = array<i64: 1, 2>}]} {
    %c0 = arith.constant 0 : index
    %c0_0 = arith.constant 0 : index
    %0 = vector.load %arg1[%c0, %c0_0] : memref<3x2xf32, #tpu.memory_space<vmem>>, vector<3x2xf32>
    %cst = arith.constant 0.000000e+00 : f32
    %1 = vector.broadcast %cst : f32 to vector<3x2xf32>
    %2 = arith.maximumf %0, %1 : vector<3x2xf32>
    %cst_1 = arith.constant dense<0.000000e+00> : vector<2xf32>
    %3 = vector.multi_reduction <add>, %2, %cst_1 [0] : vector<3x2xf32> to vector<2xf32>
    %4 = vector.shape_cast %3 : vector<2xf32> to vector<1x2xf32>
    %cst_2 = arith.constant 2.000000e+00 : f32
    %5 = vector.broadcast %cst_2 : f32 to vector<1x2xf32>
    %6 = arith.mulf %5, %4 : vector<1x2xf32>
    %c0_3 = arith.constant 0 : index
    %c0_4 = arith.constant 0 : index
    %7 = vector.load %arg2[%c0_3, %c0_4] : memref<1x2xf32, #tpu.memory_space<vmem>>, vector<1x2xf32>
    tpu.vector_store %arg2[%c0_3, %c0_4], %6 {strides = array<i32>} : memref<1x2xf32, #tpu.memory_space<vmem>>, vector<1x2xf32>,
    return
  }
  func.func @transform_0(%arg0: i32) -> (i32, i32) {
    %c0_i32 = arith.constant 0 : i32
    %c0_i32_0 = arith.constant 0 : i32
    return %c0_i32, %arg0 : i32, i32
  }
  func.func @transform_1(%arg0: i32) -> (i32, i32) {
    %c0_i32 = arith.constant 0 : i32
    %c0_i32_0 = arith.constant 0 : i32
    return %c0_i32, %arg0 : i32, i32
  }
}

</mosaic_0001>

<bundles_post_ra>
// kernel: model_forward.2
= control target key start
LH: loop header
LB: loop body
LE: loop exit
PB: predicated region body
PF: predicated region fallthrough
CT: control target
= control target key end

     0   :  { %6 = vsyncpa [#allocation3], 0  ;;  %vm15_vm0 = vcmask 10240   ;;  %s69_s8 = smov [#allocation2]   ;;  %vm24_vm1 = vcmask 8192   ;;  %s86_s0 = inlined_call_operand.vmem [shape: f32[2,3], index: 0, kind: input, shape index: {}]   ;;  %s87_s1 = inlined_call_operand.hbm [shape: f32[1,2], index: 1, kind: output, shape index: {}]  }
   0x1   :  { %v9_v0 = vld [vmem:[%s86_s0] sm:$0x7]  ;;  %s31_s9 = sshll.u32 %s69_s8, 4  ;;  %s33_s12 = sshll.u32 %s87_s1, 4  ;;  %s32_s9 = int_to_ptr.vmem [resolvable:$true] %s31_s9  ;;  %s34_s12 = int_to_ptr.hbm [resolvable:$true] %s33_s12 }
   0x2   :  { %12 = vst [vmem:[#allocation4] sm:$0xf] %v9_v0 }
   0x9   :  { %v13_v1 = vld [vmem:[#allocation4] sm:$0x7] }
   0xa   :  { %v14_v2 = vmax.f32 %v13_v1, 0.0 }
   0xc   :  { %v16_v3 = vsel %vm15_vm0, %v14_v2, 0.0 }
   0xd   :  { %v17_v4 = vrot.slane %v16_v3, 4 }
   0xf   :  { %v18_v5 = vadd.f32 %v17_v4, %v16_v3 }
  0x11   :  { %v19_v6 = vrot.slane %v18_v5, 2 }
  0x13   :  { %v20_v7 = vadd.f32 %v19_v6, %v18_v5 }
  0x15   :  { %v21_v8 = vrot.slane %v20_v7, 1 }
  0x17   :  { %v22_v9 = vadd.f32 %v21_v8, %v20_v7 }
  0x19   :  { %v23_v10 = vmul.f32 2.0, %v22_v9 }
  0x1b   :  { %25 = vst.msk [vmem:[#allocation2] sm:$0x1] %vm24_vm1, %v23_v10 }
  0x1c   :  { %36 = dma.vmem_to_hbm [thread:$0]  %s32_s9, 16, %s34_s12, [#allocation3]  }
  0x1d   :  { %67 = dma.done.wait [#allocation3], 16  }
  0x1e   :  { %68 = vsyncadd [#allocation3], 4294967280 }
  0x1f   :  { %41 = vsyncpa [#allocation3], 1 }

</bundles_post_ra>
